<compile_context>
chip_gen: v6e
topology: v6e:2x2x1
jax: 0.10.0
libtpu: 0.0.40
codegen_flags: <defaults>
</compile_context>

<pallas_src>
import functools

import jax
import jax.numpy as jnp
from jax.experimental import pallas as pl
from jax.experimental.pallas import tpu as pltpu

ALPHA = 1.0
GAMMA = 2.0  # gamma == 2 is implemented as an exact square in the kernel.


def _focal_loss_kernel(x_ref, t_ref, o_ref, *, n_valid):
    pid = pl.program_id(0)

    x_native = x_ref[...]                                # (tn, C) native dtype
    tn, c = x_native.shape
    tgt = t_ref[...]                                     # (tn, 1) int32

    # Target-logit gather straight from the native-dtype tile (one fewer
    # full-tile f32 temporary than gathering from the shifted f32 logits).
    # Note: targets outside [0, C) silently yield tgt_logit = 0 (PyTorch would
    # raise); callers must pass valid class ids.
    class_ids = jax.lax.broadcasted_iota(jnp.int32, (tn, c), 1)
    one_hot = class_ids == tgt
    tgt_logit = jnp.sum(
        jnp.where(one_hot, x_native, jnp.zeros_like(x_native)).astype(
            jnp.float32),
        axis=-1, keepdims=True)                          # (tn, 1) f32

    # Numerically stable logsumexp over the class (lane) axis.  For bf16
    # inputs keep the max/subtract in bf16 (native bf16 VALU on v6e/v7x);
    # exp/accumulate stay f32.  On f32 inputs everything is f32.
    if x_native.dtype == jnp.bfloat16:
        m_native = jnp.max(x_native, axis=-1, keepdims=True)
        shifted = (x_native - m_native).astype(jnp.float32)
        m = m_native.astype(jnp.float32)
    else:
        logits = x_native.astype(jnp.float32)
        m = jnp.max(logits, axis=-1, keepdims=True)
        shifted = logits - m
    sumexp = jnp.sum(jnp.exp(shifted), axis=-1, keepdims=True)   # (tn, 1)

    # Per-sample cross entropy (weight=None) + focal modulation.
    ce = jnp.log(sumexp) - (tgt_logit - m)               # (tn, 1)
    pt = jnp.exp(-ce)
    one_minus_pt = 1.0 - pt
    focal = ALPHA * (one_minus_pt * one_minus_pt) * ce   # gamma=2 -> square

    # Mask rows of the ragged last batch tile (out-of-bounds rows hold
    # unspecified data; jnp.where never selects them, so NaNs there are fine).
    row_ids = pid * tn + jax.lax.broadcasted_iota(jnp.int32, (tn, 1), 0)
    focal = jnp.where(row_ids < n_valid, focal, 0.0)

    # Lane-dense per-tile partial sum; summed + divided by N in the wrapper.
    o_ref[...] = jnp.broadcast_to(jnp.sum(focal), o_ref.shape)


def focal_loss(inputs, targets):
    """inputs: (N, C) float logits (f32 or bf16); targets: (N,) int class ids."""
    n, c = inputs.shape
    in_dtype = inputs.dtype
    itemsize = jnp.dtype(in_dtype).itemsize

    # Sublane packing: f32 -> 8 rows, bf16/f16 -> 16.
    row_mult = 8 * max(1, 4 // itemsize)
    # Lane-padded class extent (what the tiles actually occupy in VMEM).
    c_lane = max(128, ((c + 127) // 128) * 128)

    # Size the batch tile by its lane-padded VMEM footprint: double-buffered
    # native input tile + ~5 full-tile f32 temporaries, targeting ~40 MiB so
    # it fits v7x's 64 MiB VMEM with headroom (generous on v5e/v6e's 128 MiB).
    vmem_budget = 40 * 1024 * 1024
    per_row_bytes = 2 * c_lane * itemsize + 5 * c_lane * 4
    max_tile = max(row_mult,
                   (vmem_budget // per_row_bytes) // row_mult * row_mult)

    if n <= row_mult:
        tile_n = n  # full array dim: legal block shape even if n % 8 != 0
    else:
        # Keep >= 2 tiles so the "parallel" axis shards across both v7x TCs.
        half = ((pl.cdiv(n, 2) + row_mult - 1) // row_mult) * row_mult
        tile_n = min(max_tile, half)
    num_tiles = pl.cdiv(n, tile_n)

    t = targets.astype(jnp.int32).reshape(n, 1)

    kernel = functools.partial(_focal_loss_kernel, n_valid=n)

    # VMEM limit derived from the actual need (clamped to be v7x-safe).
    need = (2 * tile_n * c_lane * itemsize + 5 * tile_n * c_lane * 4
            + 4 * 1024 * 1024)
    vmem_limit = int(min(max(need, 16 * 1024 * 1024), 64 * 1024 * 1024))

    cost = pl.CostEstimate(
        flops=8 * n * c,
        transcendentals=n * c + 2 * n,
        bytes_accessed=n * c * itemsize + n * 4 + num_tiles * 8 * 128 * 4,
    )

    partials = pl.pallas_call(
        kernel,
        out_shape=jax.ShapeDtypeStruct((num_tiles, 8, 128), jnp.float32),
        grid=(num_tiles,),
        in_specs=[
            pl.BlockSpec((tile_n, c), lambda i: (i, 0)),
            pl.BlockSpec((tile_n, 1), lambda i: (i, 0)),
        ],
        out_specs=pl.BlockSpec((1, 8, 128), lambda i: (i, 0, 0)),
        compiler_params=pltpu.CompilerParams(
            dimension_semantics=("parallel",),
            vmem_limit_bytes=vmem_limit,
        ),
        cost_estimate=cost,
    )(inputs, t)

    # Final reduction + global mean over the ORIGINAL batch size.
    return jnp.sum(partials[:, 0, 0]) / n


def _focal_loss_ref(inputs, targets):
    # Pure-JAX reference for sanity checking.
    x = inputs.astype(jnp.float32)
    logp = jax.nn.log_softmax(x, axis=-1)
    ce = -jnp.take_along_axis(logp, targets[:, None].astype(jnp.int32),
                              axis=-1)[:, 0]
    pt = jnp.exp(-ce)
    return jnp.mean(ALPHA * (1.0 - pt) ** GAMMA * ce)


if __name__ == "__main__":
    key = jax.random.PRNGKey(0)
    k1, k2, k3, k4, k5, k6 = jax.random.split(key, 6)

    # Small demo shapes consistent with (N, C) cross-entropy inputs.
    N, C = 8, 32
    x = jax.random.normal(k1, (N, C), dtype=jnp.float32)
    t = jax.random.randint(k2, (N,), 0, C, dtype=jnp.int32)
    loss = focal_loss(x, t)
    jax.block_until_ready(loss)
    ref = _focal_loss_ref(x, t)
    assert jnp.allclose(loss, ref, atol=1e-5, rtol=1e-5), (loss, ref)

    # Ragged batch (2 tiles, masked last tile) and non-multiple-of-128 C.
    N2, C2 = 13, 40
    x2 = jax.random.normal(k3, (N2, C2), dtype=jnp.float32)
    t2 = jax.random.randint(k4, (N2,), 0, C2, dtype=jnp.int32)
    loss2 = focal_loss(x2, t2)
    jax.block_until_ready(loss2)
    ref2 = _focal_loss_ref(x2, t2)
    assert jnp.allclose(loss2, ref2, atol=1e-5, rtol=1e-5), (loss2, ref2)

    # bf16 path: bf16 max/subtract in-kernel, C spanning >1 lane group.
    N3, C3 = 96, 257
    x3 = jax.random.normal(k5, (N3, C3), dtype=jnp.float32).astype(jnp.bfloat16)
    t3 = jax.random.randint(k6, (N3,), 0, C3, dtype=jnp.int32)
    loss3 = focal_loss(x3, t3)
    jax.block_until_ready(loss3)
    ref3 = _focal_loss_ref(x3, t3)
    assert jnp.allclose(loss3, ref3, atol=5e-2, rtol=5e-2), (loss3, ref3)

    print("KERNEL_OK")
</pallas_src>

<mosaic_0001>
module attributes {stable_mosaic.version = 11 : i64} {
  func.func @_focal_loss_kernel(%arg0: i32, %arg1: memref<8x32xf32, #tpu.memory_space<vmem>>, %arg2: memref<8x1xi32, #tpu.memory_space<vmem>>, %arg3: memref<1x8x128xf32, #tpu.memory_space<vmem>>) attributes {dimension_semantics = [#tpu.dimension_semantics<parallel>], iteration_bounds = array<i64: 1>, scalar_prefetch = 0 : i64, scratch_operands = 0 : i64, tpu.core_type = #tpu.core_type<tc>, window_params = [{transform_indices = @transform_0, window_bounds = array<i64: 8, 32>}, {transform_indices = @transform_1, window_bounds = array<i64: 8, 1>}, {transform_indices = @transform_2, window_bounds = array<i64: 1, 8, 128>}]} {
    %c0 = arith.constant 0 : index
    %c0_0 = arith.constant 0 : index
    %0 = vector.load %arg1[%c0, %c0_0] : memref<8x32xf32, #tpu.memory_space<vmem>>, vector<8x32xf32>
    %c0_1 = arith.constant 0 : index
    %c0_2 = arith.constant 0 : index
    %1 = vector.load %arg2[%c0_1, %c0_2] : memref<8x1xi32, #tpu.memory_space<vmem>>, vector<8x1xi32>
    %2 = tpu.iota {dimensions = array<i32: 1>} : vector<8x32xi32>
    %3 = vector.broadcast %1 : vector<8x1xi32> to vector<8x32xi32>
    %4 = arith.cmpi eq, %2, %3 : vector<8x32xi32>
    %cst = arith.constant 0.000000e+00 : f32
    %5 = vector.broadcast %cst : f32 to vector<8x32xf32>
    %6 = arith.select %4, %0, %5 : vector<8x32xi1>, vector<8x32xf32>
    %cst_3 = arith.constant dense<0.000000e+00> : vector<8xf32>
    %7 = vector.multi_reduction <add>, %6, %cst_3 [1] : vector<8x32xf32> to vector<8xf32>
    %8 = vector.shape_cast %7 : vector<8xf32> to vector<8x1xf32>
    %cst_4 = arith.constant dense<0xFF800000> : vector<8xf32>
    %9 = vector.multi_reduction <maximumf>, %0, %cst_4 [1] : vector<8x32xf32> to vector<8xf32>
    %10 = vector.shape_cast %9 : vector<8xf32> to vector<8x1xf32>
    %11 = vector.broadcast %10 : vector<8x1xf32> to vector<8x32xf32>
    %12 = arith.subf %0, %11 : vector<8x32xf32>
    %13 = math.exp %12 : vector<8x32xf32>
    %cst_5 = arith.constant dense<0.000000e+00> : vector<8xf32>
    %14 = vector.multi_reduction <add>, %13, %cst_5 [1] : vector<8x32xf32> to vector<8xf32>
    %15 = vector.shape_cast %14 : vector<8xf32> to vector<8x1xf32>
    %16 = math.log %15 : vector<8x1xf32>
    %17 = arith.subf %8, %10 : vector<8x1xf32>
    %18 = arith.subf %16, %17 : vector<8x1xf32>
    %cst_6 = arith.constant 0.000000e+00 : f32
    %19 = vector.broadcast %cst_6 : f32 to vector<8x1xf32>
    %20 = arith.subf %19, %18 : vector<8x1xf32>
    %21 = math.exp %20 : vector<8x1xf32>
    %cst_7 = arith.constant 1.000000e+00 : f32
    %22 = vector.broadcast %cst_7 : f32 to vector<8x1xf32>
    %23 = arith.subf %22, %21 : vector<8x1xf32>
    %24 = arith.mulf %23, %23 : vector<8x1xf32>
    %cst_8 = arith.constant 1.000000e+00 : f32
    %25 = vector.broadcast %cst_8 : f32 to vector<8x1xf32>
    %26 = arith.mulf %25, %24 : vector<8x1xf32>
    %27 = arith.mulf %26, %18 : vector<8x1xf32>
    %c8_i32 = arith.constant 8 : i32
    %28 = arith.muli %arg0, %c8_i32 : i32
    %29 = tpu.iota {dimensions = array<i32: 0>} : vector<8x1xi32>
    %30 = vector.broadcast %28 : i32 to vector<8x1xi32>
    %31 = arith.addi %30, %29 : vector<8x1xi32>
    %c8_i32_9 = arith.constant 8 : i32
    %32 = vector.broadcast %c8_i32_9 : i32 to vector<8x1xi32>
    %33 = arith.cmpi slt, %31, %32 : vector<8x1xi32>
    %cst_10 = arith.constant 0.000000e+00 : f32
    %34 = vector.broadcast %cst_10 : f32 to vector<8x1xf32>
    %35 = arith.select %33, %27, %34 : vector<8x1xi1>, vector<8x1xf32>
    %36 = vector.shape_cast %35 : vector<8x1xf32> to vector<1x8x1xf32>
    %cst_11 = arith.constant dense<0.000000e+00> : vector<1xf32>
    %37 = vector.multi_reduction <add>, %36, %cst_11 [1, 2] : vector<1x8x1xf32> to vector<1xf32>
    %38 = vector.shape_cast %37 : vector<1xf32> to vector<1x1x1xf32>
    %39 = vector.extract %38[0, 0, 0] : f32 from vector<1x1x1xf32>
    %40 = vector.broadcast %39 : f32 to vector<1x8x128xf32>
    %c0_12 = arith.constant 0 : index
    %c0_13 = arith.constant 0 : index
    %c0_14 = arith.constant 0 : index
    %41 = vector.load %arg3[%c0_12, %c0_13, %c0_14] : memref<1x8x128xf32, #tpu.memory_space<vmem>>, vector<1x8x128xf32>
    tpu.vector_store %arg3[%c0_12, %c0_13, %c0_14], %40 {strides = array<i32>} : memref<1x8x128xf32, #tpu.memory_space<vmem>>, vector<1x8x128xf32>,
    return
  }
  func.func @transform_0(%arg0: i32) -> (i32, i32) {
    %c0_i32 = arith.constant 0 : i32
    %c0_i32_0 = arith.constant 0 : i32
    return %arg0, %c0_i32 : i32, i32
  }
  func.func @transform_1(%arg0: i32) -> (i32, i32) {
    %c0_i32 = arith.constant 0 : i32
    %c0_i32_0 = arith.constant 0 : i32
    return %arg0, %c0_i32 : i32, i32
  }
  func.func @transform_2(%arg0: i32) -> (i32, i32, i32) {
    %c0_i32 = arith.constant 0 : i32
    %c0_i32_0 = arith.constant 0 : i32
    %c0_i32_1 = arith.constant 0 : i32
    return %arg0, %c0_i32, %c0_i32_0 : i32, i32, i32
  }
}

</mosaic_0001>

<bundles_post_ra>
// kernel: tpu_custom_call.1
= control target key start
LH: loop header
LB: loop body
LE: loop exit
PB: predicated region body
PF: predicated region fallthrough
CT: control target
= control target key end

     0   :  { %vm21_vm0 = vcmask 261120   ;;  %s140_s0 = inlined_call_operand.vmem [shape: f32[8,32], index: 0, kind: input, shape index: {}]   ;;  %s141_s1 = inlined_call_operand.vmem [shape: s32[8,1], index: 1, kind: input, shape index: {}]   ;;  %s142_s2 = inlined_call_operand.hbm [shape: f32[1,8,128], index: 2, kind: output, shape index: {}]  }
   0x1   :  { %v12_v0 = vld [vmem:[%s140_s0] sm:$0xff] }
   0x2   :  { %7 = vsyncpa [#allocation3], 0  ;;  %v25_v1 = vsel %vm21_vm0, %v12_v0, -inf  ;;  %v111_v2 = vmov 0   ;;  %v13_v3 = vld [vmem:[%s141_s1] sm:$0xff]  ;;  %v14_v7 = vlaneseq  ;;  %vm51_vm2 = vcmask 7168  }
   0x3   :  { %82 = vset.pattern.permute.xlu0 %v111_v2  ;;  %s112_s0 = smov [#allocation2]  }
   0x4   :  { %26 = vmax.xlane.f32.xlu0 %v25_v1  ;;  %v15_v8 = vand.u32 127, %v14_v7  ;;  %s70_s1 = sshll.u32 %s112_s0, 4  ;;  %s71_s1 = int_to_ptr.vmem [resolvable:$true] %s70_s1 }
   0x5   :  { %s89_s14 = scalar_lea.vmem %s71_s1, 128  ;;  %p94_p1 = scmp.lt.s32.totalorder %s71_s1, %s71_s1 }
   0x6   :  { %p90_p0 = scmp.ne.s32.totalorder %s71_s1, %s89_s14  ;;  %p95_p2 = scmp.lt.s32.totalorder %s89_s14, %s89_s14 }
   0x8   :  { %p96_p3 = por %p95_p2, %p94_p1 }
   0xa   :  { %p97_p4 = pnand %p96_p3, %p90_p0 }
  0x1a   :  { %17 = vperm.xlu0 %82, %v13_v3  }
  0x8d   :  { %v27_v4 = vpop.xlane.xlu0 %26 }
  0x8e   :  { %v28_v5 = vsub.f32 %v12_v0, %v27_v4 }
  0x90   :  { %v29_v6 = vmul.f32 1.442695, %v28_v5 }
  0x92   :  { %83 = vpow2.f32 %v29_v6 }
  0x95   :  { %v18_v9 = vpop.permute.xlu0 %17 }
  0x96   :  { %vm19_vm1 = vcmp.eq.s32.totalorder %v15_v8, %v18_v9 }
  0x97   :  { %v20_v11 = vsel %vm19_vm1, %v12_v0, 0.0 }
  0x98   :  { %v22_v13 = vsel %vm21_vm0, %v20_v11, 0.0 }
  0x9f   :  { %v84_v10 = vpop.eup %83 }
  0xa0   :  { %v31_v12 = vsel %vm21_vm0, %v84_v10, 0.0 }
  0xa1   :  { %32 = vadd.xlane.f32.xlu1 %v31_v12 }
  0xa5   :  { %23 = vadd.xlane.f32.xlu1 %v22_v13 }
 0x12a   :  { %v33_v14 = vpop.xlane.xlu1 %32 }
 0x12b   :  { %85 = vlog2.f32 %v33_v14 }
 0x12e   :  { %v24_v15 = vpop.xlane.xlu1 %23 }
 0x12f   :  { %v36_v18 = vsub.f32 %v24_v15, %v27_v4 }
 0x138   :  { %v86_v16 = vpop.eup %85 }
 0x139   :  { %v35_v17 = vmul.f32 0.6931472, %v86_v16 }
 0x13b   :  { %v37_v19 = vsub.f32 %v35_v17, %v36_v18 }
 0x13d   :  { %v38_v20 = vsub.f32 0.0, %v37_v19 }
 0x13f   :  { %v39_v21 = vmul.f32 1.442695, %v38_v20 }
 0x141   :  { %87 = vpow2.f32 %v39_v21 }
 0x14e   :  { %v88_v22 = vpop.eup %87 }
 0x14f   :  { %v41_v23 = vsub.f32 1.0, %v88_v22 }
 0x151   :  { %v42_v24 = vmul.f32 %v41_v23, %v41_v23 }
 0x153   :  { %v43_v25 = vmul.f32 %v42_v24, %v37_v19 }
 0x155   :  { %v52_v26 = vsel %vm51_vm2, %v43_v25, 0.0 }
 0x156   :  { %53 = vadd.xlane.f32.xlu1 %v52_v26 }
 0x1df   :  { %v54_v27 = vpop.xlane.xlu1 %53 }
 0x1e0   :  { %v55_v28 = vrot.slane %v54_v27, 4 }
 0x1e2   :  { %v56_v29 = vadd.f32 %v55_v28, %v54_v27 }
 0x1e4   :  { %v57_v30 = vrot.slane %v56_v29, 2 }
 0x1e6   :  { %v58_v31 = vadd.f32 %v57_v30, %v56_v29 }
 0x1e8   :  { %v59_v32 = vrot.slane %v58_v31, 1 }
 0x1ea   :  { %v60_v33 = vadd.f32 %v59_v32, %v58_v31 }
 0x1ec   :  { %78 = vpush %v60_v33 }
 0x21d   :  { %s79_s13 = spop %78 }
 0x21e   :  { %v62_v34 = vstv %s79_s13 }
 0x21f   :  { %63 = vst [vmem:[#allocation2] sm:$0xff] %v62_v34 }
 0x220   :  { %100 = shalt.err (!%p97_p4)
}
 0x221   :  { %73 = dma.vmem_to_hbm [thread:$0]  %s71_s1, 128, %s142_s2, [#allocation3]  }
 0x222   :  { %109 = dma.done.wait [#allocation3], 128  }
 0x223   :  { %110 = vsyncadd [#allocation3], 4294967168 }
 0x224   :  { %77 = vsyncpa [#allocation3], 1 }

</bundles_post_ra>
